<compile_context>
chip_gen: v6e
topology: v6e:2x2x1
jax: 0.10.0
libtpu: 0.0.40
codegen_flags: <defaults>
</compile_context>

<pallas_src>
import functools
import math

import jax
import jax.numpy as jnp
from jax.experimental import pallas as pl
from jax.experimental.pallas import tpu as pltpu


# ----------------------------------------------------------------------------
# Parameter construction (deterministic; matches the PyTorch __init__ exactly,
# including its slightly unusual exponents: sin uses 2*i, cos uses 2*(i+1)).
# ----------------------------------------------------------------------------
def build_pe(d_model: int, max_len: int = 80) -> jnp.ndarray:
    assert d_model % 2 == 0, "PositionalEmbedding requires even d_model"
    pe = [[0.0] * d_model for _ in range(max_len)]
    for pos in range(max_len):
        for i in range(0, d_model, 2):
            pe[pos][i] = math.sin(pos / 10000 ** (2 * i / d_model))
            pe[pos][i + 1] = math.cos(pos / 10000 ** (2 * (i + 1) / d_model))
    return jnp.asarray(pe, dtype=jnp.float32)  # (max_len, d_model)


# ----------------------------------------------------------------------------
# Kernel body: fused scale + positional add on a (TB, TS, D) tile.
#   x_ref : (TB, TS, D)   activation tile
#   pe_ref: (TS, D)       positional tile (f32), broadcast over the batch dim
#   o_ref : (TB, TS, D)
# Compute is done in f32 and cast on store.
# ----------------------------------------------------------------------------
def _pos_emb_kernel(x_ref, pe_ref, o_ref, *, scale_val: float):
    x = x_ref[...].astype(jnp.float32)
    if scale_val != 1.0:  # trace-time branch: no mul emitted when scale=False
        x = x * scale_val
    o_ref[...] = (x + pe_ref[...]).astype(o_ref.dtype)


# ----------------------------------------------------------------------------
# Tiling helpers.
# ----------------------------------------------------------------------------
def _divisor_tile(dim: int, unit: int, cap: int) -> int:
    """Largest t <= cap that divides dim and is a multiple of unit; 0 if none."""
    cap = min(cap, dim)
    t = (cap // unit) * unit
    while t >= unit:
        if dim % t == 0:
            return t
        t -= unit
    return 0


def _largest_divisor_leq(dim: int, cap: int) -> int:
    """Largest divisor of dim that is <= cap (always >= 1)."""
    cap = max(1, min(cap, dim))
    for t in range(cap, 0, -1):
        if dim % t == 0:
            return t
    return 1


def _vmem_capacity_bytes() -> int:
    try:
        return int(pltpu.get_tpu_info().vmem_capacity_bytes)
    except Exception:
        return 64 * 1024 * 1024  # conservative (v7x per-TC VMEM)


def _sublane_unit(itemsize: int) -> int:
    # 8 sublanes of 32-bit; sub-32-bit dtypes pack along sublanes.
    return max(8, 32 // max(1, itemsize))


# ----------------------------------------------------------------------------
# Wrapper.
# ----------------------------------------------------------------------------
def positional_embedding(x: jnp.ndarray, pe: jnp.ndarray, scale: bool = True,
                         use_pallas=None):
    """x: (B, S, D); pe: (max_len, D).  Returns x * sqrt(D) + pe[:S] (bcast over B)."""
    B, S, D = x.shape
    assert pe.shape[1] == D and pe.shape[0] >= S
    scale_val = float(math.sqrt(D)) if scale else 1.0
    itemsize = jnp.dtype(x.dtype).itemsize

    pe_s = pe[:S].astype(jnp.float32)  # (S, D), kept in f32 for the add

    def _xla_path():
        out = x.astype(jnp.float32)
        if scale_val != 1.0:
            out = out * scale_val
        return (out + pe_s[None]).astype(x.dtype)

    # Small-problem fallback: launch + pipeline fixed cost dominates tiny inputs.
    if use_pallas is None:
        use_pallas = (B * S * D * itemsize) >= (2 << 20)
    if not use_pallas:
        return _xla_path()

    # --- generation-aware VMEM budget ----------------------------------------
    vmem_cap = _vmem_capacity_bytes()
    vmem_ask_ceiling = int(0.8 * vmem_cap)                    # never over-ask
    per_buf_cap = (16 << 20) if vmem_cap >= (96 << 20) else (8 << 20)
    budget_bytes = min(per_buf_cap,
                       max(1 << 20, (vmem_ask_ceiling - (2 << 20)) // 4))
    budget_elems = max(1, budget_bytes // itemsize)

    # --- tile selection (divisor-based; last two block dims are legal by
    #     construction: multiple of the packed sublane unit, or the full dim) --
    sub_unit = _sublane_unit(itemsize)
    if S * D <= budget_elems:
        TS = S
    else:
        TS = _divisor_tile(S, sub_unit, max(sub_unit, budget_elems // max(1, D)))
        if TS == 0:
            TS = S  # full dim (always legal); feasibility checked below
    TB = _largest_divisor_leq(B, max(1, budget_elems // (TS * D)))

    n_s = S // TS
    n_b = B // TB

    # Megacore balance (v7x has 2 TensorCores): avoid a 1-program grid.
    if n_s * n_b == 1:
        if B > 1:
            TB = _largest_divisor_leq(B, max(1, B // 2))
            n_b = B // TB
        elif S % sub_unit == 0 and (S // sub_unit) >= 2:
            split = _divisor_tile(S, sub_unit, max(sub_unit, S // 2))
            if split:
                TS, n_s = split, S // split

    # --- VMEM feasibility (x + out double-buffered, pe double-buffered) ------
    tile_bytes = TB * TS * D * itemsize
    pe_tile_bytes = TS * D * 4
    vmem_need = 4 * tile_bytes + 2 * pe_tile_bytes + (1 << 20)
    if vmem_need > vmem_ask_ceiling:
        # Pathological shape (no small enough legal tile): don't compile an
        # over-budget kernel, just let XLA handle it.
        return _xla_path()
    vmem_limit = int(min(vmem_ask_ceiling, max(vmem_need, 16 << 20)))

    cost = pl.CostEstimate(
        flops=2 * B * S * D,
        transcendentals=0,
        bytes_accessed=2 * B * S * D * itemsize + S * D * 4,
    )

    kernel = functools.partial(_pos_emb_kernel, scale_val=scale_val)

    out = pl.pallas_call(
        kernel,
        out_shape=jax.ShapeDtypeStruct((B, S, D), x.dtype),
        grid_spec=pltpu.PrefetchScalarGridSpec(
            num_scalar_prefetch=0,
            # seq tiles OUTER, batch tiles INNER -> pe block index is constant
            # across the inner loop, so its DMA is not re-issued per batch tile.
            grid=(n_s, n_b),
            in_specs=[
                pl.BlockSpec((TB, TS, D), lambda j, i: (i, j, 0)),  # x tile
                pl.BlockSpec((TS, D), lambda j, i: (j, 0)),         # pe tile
            ],
            out_specs=pl.BlockSpec((TB, TS, D), lambda j, i: (i, j, 0)),
        ),
        compiler_params=pltpu.CompilerParams(
            dimension_semantics=("parallel", "parallel"),
            vmem_limit_bytes=vmem_limit,
        ),
        cost_estimate=cost,
    )(x, pe_s)

    return out


if __name__ == "__main__":
    # Primary (module-consistent small shape): batch=2, seq=8, d_model=32.
    d_model, max_len = 32, 80
    batch, seq_len = 2, 8

    pe = build_pe(d_model, max_len)
    key = jax.random.PRNGKey(0)
    x = jax.random.normal(key, (batch, seq_len, d_model), dtype=jnp.float32)

    out = positional_embedding(x, pe, scale=True, use_pallas=True)  # force kernel
    out = jax.block_until_ready(out)
    ref = x * math.sqrt(d_model) + pe[None, :seq_len, :]
    assert out.shape == (batch, seq_len, d_model)
    assert jnp.allclose(out, ref, atol=1e-5, rtol=1e-5)

    # Also check scale=False path.
    out_ns = jax.block_until_ready(positional_embedding(x, pe, scale=False,
                                                        use_pallas=True))
    assert jnp.allclose(out_ns, x + pe[None, :seq_len, :], atol=1e-5, rtol=1e-5)

    # Secondary shape exercising the multi-program / multi-tile path
    # (lane-dense d_model, full max_len sequence).
    d2, s2, b2 = 256, 80, 4
    pe2 = build_pe(d2, max_len)
    x2 = jax.random.normal(jax.random.PRNGKey(1), (b2, s2, d2), dtype=jnp.float32)
    out2 = jax.block_until_ready(positional_embedding(x2, pe2, scale=True,
                                                      use_pallas=True))
    ref2 = x2 * math.sqrt(d2) + pe2[None, :s2, :]
    assert jnp.allclose(out2, ref2, atol=1e-4, rtol=1e-5)

    print("KERNEL_OK")
</pallas_src>

<mosaic_0001>
module attributes {stable_mosaic.version = 11 : i64} {
  func.func @_pos_emb_kernel(%arg0: i32, %arg1: i32, %arg2: memref<1x8x32xf32, #tpu.memory_space<vmem>>, %arg3: memref<8x32xf32, #tpu.memory_space<vmem>>, %arg4: memref<1x8x32xf32, #tpu.memory_space<vmem>>) attributes {dimension_semantics = [#tpu.dimension_semantics<parallel>, #tpu.dimension_semantics<parallel>], iteration_bounds = array<i64: 1, 2>, scalar_prefetch = 0 : i64, scratch_operands = 0 : i64, tpu.core_type = #tpu.core_type<tc>, window_params = [{transform_indices = @transform_0, window_bounds = array<i64: 1, 8, 32>}, {transform_indices = @transform_1, window_bounds = array<i64: 8, 32>}, {transform_indices = @transform_2, window_bounds = array<i64: 1, 8, 32>}]} {
    %c0 = arith.constant 0 : index
    %c0_0 = arith.constant 0 : index
    %c0_1 = arith.constant 0 : index
    %0 = vector.load %arg2[%c0, %c0_0, %c0_1] : memref<1x8x32xf32, #tpu.memory_space<vmem>>, vector<1x8x32xf32>
    %cst = arith.constant 5.65685415 : f32
    %1 = vector.broadcast %cst : f32 to vector<1x8x32xf32>
    %2 = arith.mulf %0, %1 : vector<1x8x32xf32>
    %c0_2 = arith.constant 0 : index
    %c0_3 = arith.constant 0 : index
    %3 = vector.load %arg3[%c0_2, %c0_3] : memref<8x32xf32, #tpu.memory_space<vmem>>, vector<8x32xf32>
    %4 = vector.shape_cast %3 : vector<8x32xf32> to vector<1x8x32xf32>
    %5 = arith.addf %2, %4 : vector<1x8x32xf32>
    %c0_4 = arith.constant 0 : index
    %c0_5 = arith.constant 0 : index
    %c0_6 = arith.constant 0 : index
    %6 = vector.load %arg4[%c0_4, %c0_5, %c0_6] : memref<1x8x32xf32, #tpu.memory_space<vmem>>, vector<1x8x32xf32>
    tpu.vector_store %arg4[%c0_4, %c0_5, %c0_6], %5 {strides = array<i32>} : memref<1x8x32xf32, #tpu.memory_space<vmem>>, vector<1x8x32xf32>,
    return
  }
  func.func @transform_0(%arg0: i32, %arg1: i32) -> (i32, i32, i32) {
    %c0_i32 = arith.constant 0 : i32
    %c0_i32_0 = arith.constant 0 : i32
    return %arg1, %arg0, %c0_i32 : i32, i32, i32
  }
  func.func @transform_1(%arg0: i32, %arg1: i32) -> (i32, i32) {
    %c0_i32 = arith.constant 0 : i32
    %c0_i32_0 = arith.constant 0 : i32
    return %arg0, %c0_i32 : i32, i32
  }
  func.func @transform_2(%arg0: i32, %arg1: i32) -> (i32, i32, i32) {
    %c0_i32 = arith.constant 0 : i32
    %c0_i32_0 = arith.constant 0 : i32
    return %arg1, %arg0, %c0_i32 : i32, i32, i32
  }
}

</mosaic_0001>

<bundles_post_ra>
// kernel: tpu_custom_call.1
= control target key start
LH: loop header
LB: loop body
LE: loop exit
PB: predicated region body
PF: predicated region fallthrough
CT: control target
= control target key end

     0   :  { %7 = vsyncpa [#allocation3], 0  ;;  %s716_s0 = inlined_call_operand.hbm [shape: f32[2,8,32], index: 0, kind: input, shape index: {}]   ;;  %s717_s1 = inlined_call_operand.hbm [shape: f32[8,32], index: 1, kind: input, shape index: {}]   ;;  %s718_s2 = inlined_call_operand.hbm [shape: f32[2,8,32], index: 2, kind: output, shape index: {}]  }
   0x1   :  { %9 = vsyncpa [#allocation3 + $0x1], 0 }
   0x2   :  { %10 = vsyncpa [#allocation6], 0 }
   0x3   :  { %11 = vsyncpa [#allocation4], 0 }
   0x4   :  { %13 = vsyncpa [#allocation4 + $0x1], 0  ;;  %s555_s9 = smov 0   ;;  %s557_s10 = smov 0  }
   0x5   :  { %s559_s11 = smov 0   ;;  %s561_s12 = smov 0  }
   0x6   :  { %s563_s13 = smov 0   ;;  %s565_s14 = smov 0  }
   0x7 LB: > { %s309_s15 = sadd.s32 4294967295, %s535_s14   ;;  %s310_s16 = sadd.s32 4294967294, %s535_s14   ;;  %s535_s14 = sphi %s565_s14, %s19_s14   ;;  %s531_s13 = sphi %s563_s13, %s735_s13   ;;  %s527_s12 = sphi %s561_s12, %s734_s12   ;;  %s523_s11 = sphi %s559_s11, %s733_s11   ;;  %s519_s10 = sphi %s557_s10, %s732_s10   ;;  %s515_s9 = sphi %s555_s9, %s731_s9  }
   0x8   : > { %p53_p0 = scmp.ne.s32.totalorder %s519_s10, %s515_s9  ;;  %p589_p1 = scmp.eq.s32.totalorder %s309_s15, 0 }
   0x9   : > { %p593_p2 = scmp.eq.s32.totalorder %s309_s15, 1  ;;  %p111_p3 = scmp.eq.s32.totalorder %s310_s16, 1 }
   0xa   : > { %p599_p4 = por %p589_p1, %p53_p0  ;;  %p311_p5 = scmp.ge.s32.totalorder %s535_s14, 1 }
   0xb   : > { %p604_p6 = por %p111_p3, %p53_p0  ;;  %p118_p7 = scmp.lt.s32.totalorder %s535_s14, 3 }
   0xc   : > { %s722_s19 = scalar_select %p599_p4, 1, 0 }
   0xd   : > { %s723_s20 = scalar_select %p604_p6, 1, 0 }
   0xe   : > { %p609_p8 = pnand %p311_p5, %p118_p7  ;;  %s537_s22 = smov [#allocation5]  }
   0xf   : > { %s133_s23 = sshll.u32 %s537_s22, 4  ;;  %s28_s25 = sadd.s32 1, %s531_s13  ;;  %s134_s23 = int_to_ptr.vmem [resolvable:$true] %s133_s23 }
  0x10   : > { %p332_p10 = pneg %p609_p8  ;;  %s40_s26 = sadd.s32 1, %s523_s11 }
  0x11   : > { %p29_p12 = scmp.ge.s32.totalorder %s28_s25, 2  ;;  %s408_s27 = scalar_lea.vmem %s134_s23, 128 }
  0x12   : > { %p618_p11 = pnand %p332_p10, %p589_p1  ;;  %p409_p0 = scmp.ne.s32.totalorder %s134_s23, %s408_s27 }
  0x13   : > { %p416_p7 = scmp.lt.s32.totalorder %s134_s23, %s134_s23  ;;  %p417_p6 = scmp.lt.s32.totalorder %s408_s27, %s408_s27 }
  0x14   : > { %p399_p13 = pneg %p618_p11 }
  0x15   : > { %p418_p9 = por %p417_p6, %p416_p7 }
  0x16   : > { %p411_p3 = pnand %p409_p0, %p399_p13 }
  0x18   : > { %p412_p5 = pneg %p411_p3 }
  0x1a   : > { %p419_p4 = pnand %p418_p9, %p412_p5 }
  0x1c   : > { %422 = shalt.err (!%p419_p4)
}
  0x1d   : > { %335 = dma.hbm_to_vmem [thread:$0]  (!%p618_p11), %s717_s1, 128, %s134_s23, [#allocation6]  }
  0x1e   : > { %s737_s25 = smov (%p29_p12, %s28_s25), 0  ;;  %p47_p6 = scmp.ne.s32.totalorder %s523_s11, %s519_s10 }
  0x1f   : > { %p48_p4 = scmp.eq.s32.totalorder %s535_s14, 0  ;;  %s35_s30 = ssub.s32 %s531_s13, %s737_s25 }
  0x20   : > { %p345_p9 = scmp.lt.s32.totalorder %s535_s14, 2  ;;  %p38_p10 = scmp.eq.s32.totalorder %s35_s30, 0 }
  0x21   : > { %p49_p13 = por %p48_p4, %p47_p6  ;;  %p641_p0 = por %p593_p2, %p47_p6 }
  0x22   : > { %s144_s4 = sand.u32 1, %s523_s11   ;;  %s315_s7 = sshll.u32 %s531_s13, 7 }
  0x23   : > { %s647_s5 = scalar_select %p38_p10, %s523_s11, %s40_s26  }
  0x24   : > { %s314_s6 = sshll.u32 %s144_s4, 3  ;;  %s154_s16 = scalar_lea.hbm %s716_s0, %s315_s7 }
  0x25   : > { %s148_s22 = scalar_lea.vmem [#allocation2], %s314_s6  ;;  %p653_p11 = pnand %p345_p9, %p49_p13 }
  0x26   : > { %s156_s23 = sshll.u32 %s148_s22, 4  ;;  %s145_s18 = scalar_lea.sflag [#allocation3], %s144_s4  ;;  %s157_s23 = int_to_ptr.vmem [resolvable:$true] %s156_s23 }
  0x27   : > { %p425_p2 = pneg %p653_p11  ;;  %s436_s27 = scalar_lea.vmem %s157_s23, 128 }
  0x28   : > { %p437_p12 = scmp.ne.s32.totalorder %s157_s23, %s436_s27  ;;  %s538_s26 = smov [#allocation2]  }
  0x29   : > { %s441_s28 = sshll.u32 %s538_s26, 4  ;;  %s442_s28 = int_to_ptr.vmem [resolvable:$false] %s441_s28 }
  0x2a   : > { %p439_p3 = pnand %p437_p12, %p425_p2  ;;  %s443_s29 = scalar_lea.vmem %s442_s28, 256 }
  0x2b   : > { %p444_p7 = scmp.lt.s32.totalorder %s157_s23, %s442_s28  ;;  %p445_p6 = scmp.lt.s32.totalorder %s443_s29, %s436_s27 }
  0x2c   : > { %p440_p5 = pneg %p439_p3 }
  0x2d   : > { %p446_p4 = por %p445_p6, %p444_p7 }
  0x2f   : > { %p447_p10 = pnand %p446_p4, %p440_p5 }
  0x31   : > { %450 = shalt.err (!%p447_p10)
}
  0x32   : > { %339 = dma.hbm_to_vmem [thread:$0]  (!%p653_p11), %s154_s16, 128, %s157_s23, %s145_s18  }
  0x33   : > { %165 = sbr.rel (%p609_p8) target bundleno = 83 (0x53), region = 28  ;;  %s664_s30 = sand.u32 (!%p609_p8), 1, %s519_s10  }
  0x34   : > { %s317_s4 = sshll.u32 (!%p609_p8), %s664_s30, 3  ;;  %s168_s6 = scalar_lea.sflag (!%p609_p8), [#allocation3], %s664_s30 }
  0x35   : > { %s171_s7 = scalar_lea.vmem (!%p609_p8), [#allocation2], %s317_s4  ;;  %p728_p9 = scmp.ne.s32.totalorder (!%p609_p8), %s722_s19, 0 }
  0x38   : > { %502 = dma.done.wait (%p728_p9), %s168_s6, 128  }
  0x39   : > { %504 = vsyncadd (%p728_p9), %s168_s6, 4294967168 }
  0x3a   : > { %506 = dma.done.wait (%p589_p1), [#allocation6], 128  }
  0x3b   : > { %508 = vsyncadd (%p589_p1), [#allocation6], 4294967168  ;;  %v196_v0 = vld [vmem:[%s171_s7] sm:$0xff]  ;;  %v198_v1 = vld [vmem:[#allocation5] sm:$0xff]  ;;  %s195_s21 = scalar_lea.vmem [#allocation7], %s317_s4  ;;  %s321_s15 = sshll.u32 %s527_s12, 7 }
  0x3c   : > { %s217_s8 = sshll.u32 %s195_s21, 4  ;;  %v197_v2 = vmul.f32 5.656854, %v196_v0  ;;  %vm200_vm0 = vcmask 261120   ;;  %s215_s22 = scalar_lea.hbm %s718_s2, %s321_s15  ;;  %s218_s8 = int_to_ptr.vmem [resolvable:$true] %s217_s8 }
  0x3d   : > { %s203_s23 = scalar_lea.sflag [#allocation4], %s664_s30  ;;  %s451_s17 = scalar_lea.vmem %s218_s8, 128 }
  0x3e   : > { %v199_v3 = vadd.f32 %v198_v1, %v197_v2  ;;  %p452_p1 = scmp.ne.s32.totalorder %s218_s8, %s451_s17  ;;  %s539_s24 = smov [#allocation7]  }
  0x3f   : > { %s455_s18 = sshll.u32 %s539_s24, 4  ;;  %s456_s18 = int_to_ptr.vmem [resolvable:$false] %s455_s18 }
  0x40   : > { %201 = vst.msk [vmem:[%s195_s21] sm:$0xff] %vm200_vm0, %v199_v3  ;;  %p453_p8 = pnand %p452_p1, %p641_p0  ;;  %s457_s27 = scalar_lea.vmem %s456_s18, 256 }
  0x41   : > { %p458_p11 = scmp.lt.s32.totalorder %s218_s8, %s456_s18  ;;  %p459_p2 = scmp.lt.s32.totalorder %s457_s27, %s451_s17 }
  0x42   : > { %p454_p13 = pneg %p453_p8 }
  0x43   : > { %p460_p12 = por %p459_p2, %p458_p11 }
  0x45   : > { %p461_p3 = pnand %p460_p12, %p454_p13 }
  0x47   : > { %464 = shalt.err (!%p461_p3)
}
  0x48   : > { %s465_s12 = scalar_lea.hbm %s215_s22, 128  ;;  %s469_s29 = scalar_lea.hbm %s718_s2, 256 }
  0x49   : > { %p466_p5 = scmp.ne.s32.totalorder %s215_s22, %s465_s12  ;;  %p470_p4 = scmp.lt.s32.totalorder %s215_s22, %s718_s2 }
  0x4a   : > { %p471_p10 = scmp.lt.s32.totalorder %s469_s29, %s465_s12 }
  0x4b   : > { %p467_p7 = pnand %p466_p5, %p641_p0 }
  0x4c   : > { %p472_p9 = por %p471_p10, %p470_p4 }
  0x4d   : > { %p468_p6 = pneg %p467_p7 }
  0x4f   : > { %p473_p1 = pnand %p472_p9, %p468_p6 }
  0x51   : > { %476 = shalt.err (!%p473_p1)
}
  0x52   : > { %330 = dma.vmem_to_hbm [thread:$0]  (%p641_p0), %s218_s8, 128, %s215_s22, %s203_s23  }
  0x53 PF: > { %s229_s6 = sand.u32 1, %s515_s9   ;;  %p729_p8 = scmp.ne.s32.totalorder %s723_s20, 0 }
  0x54   : > { %p730_p13 = scmp.ge.s32.totalorder %s535_s14, 2  ;;  %s230_s7 = scalar_lea.sflag [#allocation4], %s229_s6 }
  0x56   : > { %p341_p11 = pnand %p730_p13, %p729_p8 }
  0x58   : > { %p342_p2 = pneg %p341_p11 }
  0x5a   : > { %510 = dma.done.wait (%p342_p2), %s230_s7, 128  }
  0x5b   : > { %512 = vsyncadd (%p342_p2), %s230_s7, 4294967168  ;;  %s19_s14 = sadd.s32 1, %s535_s14   ;;  %s731_s9 = smov %s519_s10 }
  0x5c   : > { %p16_p12 = scmp.ge.s32.totalorder %s19_s14, 4   ;;  %s732_s10 = smov %s523_s11 }
  0x5d   : > { %s733_s11 = smov %s647_s5  ;;  %s734_s12 = smov %s531_s13 }
  0x5e   : > { %s735_s13 = smov %s737_s25  ;;  %18 = sbr.rel (!%p16_p12) target bundleno = 7 (0x7), region = 78 }
  0x63   :  { %235 = vsyncpa [#allocation3], 1 }
  0x64   :  { %237 = vsyncpa [#allocation3 + $0x1], 1 }
  0x65   :  { %238 = vsyncpa [#allocation6], 1 }
  0x66   :  { %239 = vsyncpa [#allocation4], 1 }
  0x67   :  { %241 = vsyncpa [#allocation4 + $0x1], 1 }

</bundles_post_ra>
